<compile_context>
chip_gen: v7x
topology: tpu7x:2x2x1
jax: 0.10.0
libtpu: 0.0.40
codegen_flags: <defaults>
</compile_context>

<pallas_src>
import functools
import math

import jax
import jax.numpy as jnp
from jax.experimental import pallas as pl
from jax.experimental.pallas import tpu as pltpu


def _round_up(a: int, m: int) -> int:
    return (a + m - 1) // m * m


def _kaln_kernel(scal_ref, x_ref, w_ref, gb_ref, o_ref, basis_ref, *,
                 degree: int, fin: int, fout: int):
    f32 = jnp.float32
    mxu_dt = basis_ref.dtype

    x = x_ref[...].astype(f32)                                   # (TB, Fin)

    # Exact SiLU (true divide). NOT pl.reciprocal(approx=True): the approximate EUP path
    # costs ~1e-2 at the output once amplified by LayerNorm.
    def _silu(t):
        return t * (1.0 / (1.0 + jnp.exp(-t)))

    # ---- column block 0 of the fused basis: SiLU(x) (the "base" branch operand) -------
    basis_ref[:, 0:fin] = _silu(x).astype(mxu_dt)

    # ---- normalize x to [-1, 1] with the GLOBAL min and 2/(max-min) SMEM scalars ------
    x_min = scal_ref[0, 0]
    scale = scal_ref[0, 1]                                       # 2 / (max - min)
    x_n = (x - x_min) * scale - 1.0

    # ---- Legendre P0..P_degree streamed into the scratch slab (3 polys live max) ------
    # Recurrence constants are Python floats -> no per-tile divides on the VPU.
    basis_ref[:, fin:2 * fin] = jnp.ones_like(x_n).astype(mxu_dt)   # P0
    basis_ref[:, 2 * fin:3 * fin] = x_n.astype(mxu_dt)              # P1
    p_prev, p_cur = jnp.ones_like(x_n), x_n
    for n in range(1, degree):                                      # P2 .. P_degree
        c1 = (2.0 * n + 1.0) / (n + 1.0)
        c2 = n / (n + 1.0)
        p_next = c1 * x_n * p_cur - c2 * p_prev
        basis_ref[:, (n + 2) * fin:(n + 3) * fin] = p_next.astype(mxu_dt)
        p_prev, p_cur = p_cur, p_next

    # ---- single fused contraction: K = (degree+2)*Fin covers base + all degrees -------
    y = jnp.dot(basis_ref[...], w_ref[...], preferred_element_type=f32)   # (TB, Fout_pad)

    # ---- LayerNorm over the REAL fout columns (padded cols of y are exactly 0), SiLU --
    inv_n = 1.0 / fout
    mean = jnp.sum(y, axis=-1, keepdims=True) * inv_n
    d = y - mean
    if fout != y.shape[-1]:                                      # mask padded columns
        col = jax.lax.broadcasted_iota(jnp.int32, y.shape, 1)
        d = jnp.where(col < fout, d, 0.0)
    var = jnp.sum(d * d, axis=-1, keepdims=True) * inv_n         # biased, like nn.LayerNorm
    y_n = d * jax.lax.rsqrt(var + 1e-5)
    y_n = y_n * gb_ref[0:1, :].astype(f32) + gb_ref[1:2, :].astype(f32)
    o_ref[...] = _silu(y_n).astype(o_ref.dtype)


def _resident_spec(block_shape):
    """Grid-invariant block: single-buffered if pipeline_mode is available."""
    idx_map = lambda i: (0,) * len(block_shape)
    try:
        return pl.BlockSpec(block_shape, idx_map, pipeline_mode=pl.Buffered(1))
    except TypeError:  # older BlockSpec without pipeline_mode
        return pl.BlockSpec(block_shape, idx_map)


def kaln_layer(x, base_weight, poly_weight, ln_gamma, ln_beta, *, degree: int,
               block_batch: int = 256, mxu_dtype=None, fout_lane_multiple: int = 128):
    """x: (B, Fin); base_weight: (Fout, Fin); poly_weight: (Fout, Fin*(degree+1))."""
    assert degree >= 1, "kernel materializes P1; degree >= 1 required"
    B, fin = x.shape
    fout = base_weight.shape[0]
    mxu_dt = base_weight.dtype if mxu_dtype is None else jnp.dtype(mxu_dtype)

    # Global min/max (reference semantics).  One extra HBM read of x is inherent: the
    # normalization needs the global extrema before any tile can be processed.
    # NOTE: x.max() == x.min() divides by zero, exactly like the PyTorch module.
    x_min = jnp.min(x).astype(jnp.float32)
    scale = 2.0 / (jnp.max(x).astype(jnp.float32) - x_min)
    scalars = jnp.stack([x_min, scale]).reshape(1, 2)

    # Lane-dense output: pad Fout to a multiple of 128 (pass fout_lane_multiple=256 on
    # v6e/v7x when the extra weight/store padding is worth the 256-wide MXU fill).
    fout_pad = _round_up(fout, fout_lane_multiple)

    # Fused weight slab: rows [0:Fin) = W_base^T; rows [Fin + d*Fin : Fin + (d+1)*Fin) =
    # degree-d Legendre weights (degree-major) -> matches the kernel's basis layout.
    pw_t = jnp.transpose(poly_weight.reshape(fout, fin, degree + 1),
                         (2, 1, 0)).reshape((degree + 1) * fin, fout)
    w = jnp.concatenate([base_weight.T, pw_t], axis=0).astype(mxu_dt)
    k_tot = (degree + 2) * fin

    gb = jnp.stack([ln_gamma, ln_beta]).astype(jnp.float32)      # (2, Fout): gamma; beta
    if fout_pad != fout:
        # Zero padding is load-bearing: padded output columns of base+poly are exactly 0,
        # so the masked LayerNorm statistics over the real columns stay correct.
        w = jnp.pad(w, ((0, 0), (0, fout_pad - fout)))
        gb = jnp.pad(gb, ((0, 0), (0, fout_pad - fout)))

    # Batch tiling: no batch padding / no output row slice; cdiv grid + masked edge tile.
    tb = min(_round_up(block_batch, 8), _round_up(B, 8))
    grid = (pl.cdiv(B, tb),)

    # VMEM budget: 1x resident weights (Buffered(1)) + 2x streamed x/out tiles + basis
    # scratch + f32 temporaries + headroom, capped at 85% of the per-core VMEM.
    w_isz = jnp.dtype(mxu_dt).itemsize
    resident = w.size * w_isz + gb.size * 4
    streamed = 2 * (tb * fin + tb * fout_pad) * x.dtype.itemsize
    scratch = tb * k_tot * w_isz
    temps = tb * (4 * fin + 4 * fout_pad) * 4
    need = resident + streamed + scratch + temps + (4 << 20)
    try:
        vmem_cap = int(pltpu.get_tpu_info().vmem_capacity_bytes * 0.85)
    except Exception:
        vmem_cap = 56 << 20                                      # v7x-safe fallback
    vmem_limit = int(min(max(need, 32 << 20), max(vmem_cap, 32 << 20)))

    kernel = functools.partial(_kaln_kernel, degree=degree, fin=fin, fout=fout)

    out = pl.pallas_call(
        kernel,
        out_shape=jax.ShapeDtypeStruct((B, fout_pad), x.dtype),
        grid_spec=pltpu.PrefetchScalarGridSpec(
            num_scalar_prefetch=0,
            grid=grid,
            in_specs=[
                pl.BlockSpec(memory_space=pltpu.MemorySpace.SMEM),   # [x_min, 2/(max-min)]
                pl.BlockSpec((tb, fin), lambda i: (i, 0)),           # x tile (streamed)
                _resident_spec((k_tot, fout_pad)),                   # fused weight slab
                _resident_spec((2, fout_pad)),                       # [gamma; beta]
            ],
            out_specs=pl.BlockSpec((tb, fout_pad), lambda i: (i, 0)),  # out tile (streamed)
            scratch_shapes=[pltpu.VMEM((tb, k_tot), mxu_dt)],          # fused basis slab
        ),
        compiler_params=pltpu.CompilerParams(
            dimension_semantics=("parallel",),    # 2 TensorCores on v7x; no-op on v5e/v6e
            vmem_limit_bytes=vmem_limit,
        ),
    )(scalars, x, w, gb)

    return out[:, :fout] if fout_pad != fout else out


def _reference(x, base_weight, poly_weight, ln_gamma, ln_beta, degree):
    """Pure-JAX mirror of the PyTorch forward for verification."""
    base_out = jax.nn.silu(x) @ base_weight.T
    x_n = 2.0 * (x - x.min()) / (x.max() - x.min()) - 1.0
    polys = [jnp.ones_like(x_n), x_n]
    for n in range(1, degree):
        polys.append(((2.0 * n + 1.0) * x_n * polys[-1] - n * polys[-2]) / (n + 1.0))
    basis = jnp.stack(polys[: degree + 1], axis=-1).reshape(x.shape[0], -1)
    poly_out = basis @ poly_weight.T
    y = base_out + poly_out
    mean = y.mean(axis=-1, keepdims=True)
    var = ((y - mean) ** 2).mean(axis=-1, keepdims=True)
    y_n = (y - mean) / jnp.sqrt(var + 1e-5)
    return jax.nn.silu(y_n * ln_gamma + ln_beta)


if __name__ == "__main__":
    key = jax.random.PRNGKey(0)
    k_x, k_bw, k_pw, k_g, k_b = jax.random.split(key, 5)

    # Shapes chosen to exercise: multi-step grid (4 tiles), a partial edge tile
    # (100 % 32 = 4 rows), and the lane-dense Fout padding / masked-LayerNorm path.
    batch = 100
    input_features = 32
    output_features = 64
    degree = 3

    x = jax.random.normal(k_x, (batch, input_features), dtype=jnp.float32)

    # kaiming_uniform-style init (gain=1 for 'linear'): U(-sqrt(3/fan_in), +sqrt(3/fan_in))
    bound_b = math.sqrt(3.0 / input_features)
    base_weight = jax.random.uniform(
        k_bw, (output_features, input_features), jnp.float32, -bound_b, bound_b)
    bound_p = math.sqrt(3.0 / (input_features * (degree + 1)))
    poly_weight = jax.random.uniform(
        k_pw, (output_features, input_features * (degree + 1)), jnp.float32,
        -bound_p, bound_p)
    # nn.LayerNorm default init is gamma=1, beta=0; perturb so the affine path is tested.
    ln_gamma = 1.0 + 0.1 * jax.random.normal(k_g, (output_features,), jnp.float32)
    ln_beta = 0.1 * jax.random.normal(k_b, (output_features,), jnp.float32)

    fn = jax.jit(functools.partial(kaln_layer, degree=degree, block_batch=32))
    out = jax.block_until_ready(fn(x, base_weight, poly_weight, ln_gamma, ln_beta))
    assert out.shape == (batch, output_features)

    ref = _reference(x, base_weight, poly_weight, ln_gamma, ln_beta, degree)
    # All non-matmul math in the kernel is exact f32 (no approximate reciprocal anywhere),
    # so the only systematic difference vs. the pure-JAX mirror is the backend's DEFAULT
    # matmul precision (bf16 passes on TPU) applied to differently-shaped contractions
    # (one fused K=(degree+2)*Fin dot here vs. separate base/poly dots in the reference).
    # 2e-2 bounds that comfortably; with full-f32 matmul precision the two agree to ~1e-5.
    err = float(jnp.max(jnp.abs(out - ref)))
    assert jnp.allclose(out, ref, atol=2e-2, rtol=2e-2), (
        f"mismatch vs pure-JAX reference: max|diff|={err}")

    print("KERNEL_OK")
</pallas_src>

<mosaic_0001>
module attributes {stable_mosaic.version = 11 : i64} {
  func.func @_kaln_kernel(%arg0: i32, %arg1: memref<1x2xf32, #tpu.memory_space<smem>>, %arg2: memref<32x32xf32, #tpu.memory_space<vmem>>, %arg3: memref<160x128xf32, #tpu.memory_space<vmem>>, %arg4: memref<2x128xf32, #tpu.memory_space<vmem>>, %arg5: memref<32x128xf32, #tpu.memory_space<vmem>>, %arg6: memref<32x160xf32, #tpu.memory_space<vmem>>) attributes {dimension_semantics = [#tpu.dimension_semantics<parallel>], iteration_bounds = array<i64: 4>, scalar_prefetch = 0 : i64, scratch_operands = 1 : i64, tpu.core_type = #tpu.core_type<tc>, window_params = [{transform_indices = @transform_0, window_bounds = array<i64: 1, 2>}, {transform_indices = @transform_1, window_bounds = array<i64: 32, 32>}, {pipeline_mode = #tpu.pipeline_mode<synchronous>, transform_indices = @transform_2, window_bounds = array<i64: 160, 128>}, {pipeline_mode = #tpu.pipeline_mode<synchronous>, transform_indices = @transform_3, window_bounds = array<i64: 2, 128>}, {transform_indices = @transform_4, window_bounds = array<i64: 32, 128>}]} {
    %c0 = arith.constant 0 : index
    %c0_0 = arith.constant 0 : index
    %0 = vector.load %arg2[%c0, %c0_0] : memref<32x32xf32, #tpu.memory_space<vmem>>, vector<32x32xf32>
    %cst = arith.constant 0.000000e+00 : f32
    %1 = vector.broadcast %cst : f32 to vector<32x32xf32>
    %2 = arith.subf %1, %0 : vector<32x32xf32>
    %3 = math.exp %2 : vector<32x32xf32>
    %cst_1 = arith.constant 1.000000e+00 : f32
    %4 = vector.broadcast %cst_1 : f32 to vector<32x32xf32>
    %5 = arith.addf %4, %3 : vector<32x32xf32>
    %cst_2 = arith.constant 1.000000e+00 : f32
    %6 = vector.broadcast %cst_2 : f32 to vector<32x32xf32>
    %7 = arith.divf %6, %5 : vector<32x32xf32>
    %8 = arith.mulf %0, %7 : vector<32x32xf32>
    %c0_3 = arith.constant 0 : index
    %c0_4 = arith.constant 0 : index
    %9 = vector.load %arg6[%c0_3, %c0_4] : memref<32x160xf32, #tpu.memory_space<vmem>>, vector<32x32xf32>
    tpu.vector_store %arg6[%c0_3, %c0_4], %8 {strides = array<i32>} : memref<32x160xf32, #tpu.memory_space<vmem>>, vector<32x32xf32>,
    %c0_5 = arith.constant 0 : index
    %c0_6 = arith.constant 0 : index
    %10 = memref.load %arg1[%c0_5, %c0_6] : memref<1x2xf32, #tpu.memory_space<smem>>
    %c0_7 = arith.constant 0 : index
    %c1 = arith.constant 1 : index
    %11 = memref.load %arg1[%c0_7, %c1] : memref<1x2xf32, #tpu.memory_space<smem>>
    %12 = vector.broadcast %10 : f32 to vector<32x32xf32>
    %13 = arith.subf %0, %12 : vector<32x32xf32>
    %14 = vector.broadcast %11 : f32 to vector<32x32xf32>
    %15 = arith.mulf %13, %14 : vector<32x32xf32>
    %cst_8 = arith.constant 1.000000e+00 : f32
    %16 = vector.broadcast %cst_8 : f32 to vector<32x32xf32>
    %17 = arith.subf %15, %16 : vector<32x32xf32>
    %cst_9 = arith.constant 1.000000e+00 : f32
    %18 = vector.broadcast %cst_9 : f32 to vector<32x32xf32>
    %c0_10 = arith.constant 0 : index
    %c32 = arith.constant 32 : index
    %19 = vector.load %arg6[%c0_10, %c32] : memref<32x160xf32, #tpu.memory_space<vmem>>, vector<32x32xf32>
    tpu.vector_store %arg6[%c0_10, %c32], %18 {strides = array<i32>} : memref<32x160xf32, #tpu.memory_space<vmem>>, vector<32x32xf32>,
    %c0_11 = arith.constant 0 : index
    %c64 = arith.constant 64 : index
    %20 = vector.load %arg6[%c0_11, %c64] : memref<32x160xf32, #tpu.memory_space<vmem>>, vector<32x32xf32>
    tpu.vector_store %arg6[%c0_11, %c64], %17 {strides = array<i32>} : memref<32x160xf32, #tpu.memory_space<vmem>>, vector<32x32xf32>,
    %cst_12 = arith.constant 1.000000e+00 : f32
    %21 = vector.broadcast %cst_12 : f32 to vector<32x32xf32>
    %cst_13 = arith.constant 1.500000e+00 : f32
    %22 = vector.broadcast %cst_13 : f32 to vector<32x32xf32>
    %23 = arith.mulf %22, %17 : vector<32x32xf32>
    %24 = arith.mulf %23, %17 : vector<32x32xf32>
    %cst_14 = arith.constant 5.000000e-01 : f32
    %25 = vector.broadcast %cst_14 : f32 to vector<32x32xf32>
    %26 = arith.mulf %25, %21 : vector<32x32xf32>
    %27 = arith.subf %24, %26 : vector<32x32xf32>
    %c0_15 = arith.constant 0 : index
    %c96 = arith.constant 96 : index
    %28 = vector.load %arg6[%c0_15, %c96] : memref<32x160xf32, #tpu.memory_space<vmem>>, vector<32x32xf32>
    tpu.vector_store %arg6[%c0_15, %c96], %27 {strides = array<i32>} : memref<32x160xf32, #tpu.memory_space<vmem>>, vector<32x32xf32>,
    %cst_16 = arith.constant 1.66666663 : f32
    %29 = vector.broadcast %cst_16 : f32 to vector<32x32xf32>
    %30 = arith.mulf %29, %17 : vector<32x32xf32>
    %31 = arith.mulf %30, %27 : vector<32x32xf32>
    %cst_17 = arith.constant 0.666666686 : f32
    %32 = vector.broadcast %cst_17 : f32 to vector<32x32xf32>
    %33 = arith.mulf %32, %17 : vector<32x32xf32>
    %34 = arith.subf %31, %33 : vector<32x32xf32>
    %c0_18 = arith.constant 0 : index
    %c128 = arith.constant 128 : index
    %35 = vector.load %arg6[%c0_18, %c128] : memref<32x160xf32, #tpu.memory_space<vmem>>, vector<32x32xf32>
    tpu.vector_store %arg6[%c0_18, %c128], %34 {strides = array<i32>} : memref<32x160xf32, #tpu.memory_space<vmem>>, vector<32x32xf32>,
    %c0_19 = arith.constant 0 : index
    %c0_20 = arith.constant 0 : index
    %36 = vector.load %arg6[%c0_19, %c0_20] : memref<32x160xf32, #tpu.memory_space<vmem>>, vector<32x160xf32>
    %c0_21 = arith.constant 0 : index
    %c0_22 = arith.constant 0 : index
    %37 = vector.load %arg3[%c0_21, %c0_22] : memref<160x128xf32, #tpu.memory_space<vmem>>, vector<160x128xf32>
    %cst_23 = arith.constant dense<0.000000e+00> : vector<32x128xf32>
    %38 = tpu.matmul %36, %37, %cst_23 {dimension_numbers = #tpu.dot_dimension_numbers<[1], [0], [0], [1], [0, 0, 1, 1], [], []>} : vector<32x160xf32>, vector<160x128xf32>, vector<32x128xf32> -> vector<32x128xf32>
    %cst_24 = arith.constant dense<0.000000e+00> : vector<32xf32>
    %39 = vector.multi_reduction <add>, %38, %cst_24 [1] : vector<32x128xf32> to vector<32xf32>
    %40 = vector.shape_cast %39 : vector<32xf32> to vector<32x1xf32>
    %cst_25 = arith.constant 1.562500e-02 : f32
    %41 = vector.broadcast %cst_25 : f32 to vector<32x1xf32>
    %42 = arith.mulf %40, %41 : vector<32x1xf32>
    %43 = vector.broadcast %42 : vector<32x1xf32> to vector<32x128xf32>
    %44 = arith.subf %38, %43 : vector<32x128xf32>
    %45 = tpu.iota {dimensions = array<i32: 1>} : vector<32x128xi32>
    %c64_i32 = arith.constant 64 : i32
    %46 = vector.broadcast %c64_i32 : i32 to vector<32x128xi32>
    %47 = arith.cmpi slt, %45, %46 : vector<32x128xi32>
    %cst_26 = arith.constant 0.000000e+00 : f32
    %48 = vector.broadcast %cst_26 : f32 to vector<32x128xf32>
    %49 = arith.select %47, %44, %48 : vector<32x128xi1>, vector<32x128xf32>
    %50 = arith.mulf %49, %49 : vector<32x128xf32>
    %cst_27 = arith.constant dense<0.000000e+00> : vector<32xf32>
    %51 = vector.multi_reduction <add>, %50, %cst_27 [1] : vector<32x128xf32> to vector<32xf32>
    %52 = vector.shape_cast %51 : vector<32xf32> to vector<32x1xf32>
    %cst_28 = arith.constant 1.562500e-02 : f32
    %53 = vector.broadcast %cst_28 : f32 to vector<32x1xf32>
    %54 = arith.mulf %52, %53 : vector<32x1xf32>
    %cst_29 = arith.constant 9.99999974E-6 : f32
    %55 = vector.broadcast %cst_29 : f32 to vector<32x1xf32>
    %56 = arith.addf %54, %55 : vector<32x1xf32>
    %57 = math.rsqrt %56 : vector<32x1xf32>
    %58 = vector.broadcast %57 : vector<32x1xf32> to vector<32x128xf32>
    %59 = arith.mulf %49, %58 : vector<32x128xf32>
    %c0_30 = arith.constant 0 : index
    %c0_31 = arith.constant 0 : index
    %60 = vector.load %arg4[%c0_30, %c0_31] : memref<2x128xf32, #tpu.memory_space<vmem>>, vector<1x128xf32>
    %61 = vector.broadcast %60 : vector<1x128xf32> to vector<32x128xf32>
    %62 = arith.mulf %59, %61 : vector<32x128xf32>
    %c1_32 = arith.constant 1 : index
    %c0_33 = arith.constant 0 : index
    %63 = vector.load %arg4[%c1_32, %c0_33] : memref<2x128xf32, #tpu.memory_space<vmem>>, vector<1x128xf32>
    %64 = vector.broadcast %63 : vector<1x128xf32> to vector<32x128xf32>
    %65 = arith.addf %62, %64 : vector<32x128xf32>
    %cst_34 = arith.constant 0.000000e+00 : f32
    %66 = vector.broadcast %cst_34 : f32 to vector<32x128xf32>
    %67 = arith.subf %66, %65 : vector<32x128xf32>
    %68 = math.exp %67 : vector<32x128xf32>
    %cst_35 = arith.constant 1.000000e+00 : f32
    %69 = vector.broadcast %cst_35 : f32 to vector<32x128xf32>
    %70 = arith.addf %69, %68 : vector<32x128xf32>
    %cst_36 = arith.constant 1.000000e+00 : f32
    %71 = vector.broadcast %cst_36 : f32 to vector<32x128xf32>
    %72 = arith.divf %71, %70 : vector<32x128xf32>
    %73 = arith.mulf %65, %72 : vector<32x128xf32>
    %c0_37 = arith.constant 0 : index
    %c0_38 = arith.constant 0 : index
    %74 = vector.load %arg5[%c0_37, %c0_38] : memref<32x128xf32, #tpu.memory_space<vmem>>, vector<32x128xf32>
    tpu.vector_store %arg5[%c0_37, %c0_38], %73 {strides = array<i32>} : memref<32x128xf32, #tpu.memory_space<vmem>>, vector<32x128xf32>,
    return
  }
  func.func @transform_0(%arg0: i32) -> (i32, i32) {
    %c0_i32 = arith.constant 0 : i32
    %c0_i32_0 = arith.constant 0 : i32
    %c0_i32_1 = arith.constant 0 : i32
    return %c0_i32, %c0_i32_0 : i32, i32
  }
  func.func @transform_1(%arg0: i32) -> (i32, i32) {
    %c0_i32 = arith.constant 0 : i32
    %c0_i32_0 = arith.constant 0 : i32
    return %arg0, %c0_i32 : i32, i32
  }
  func.func @transform_2(%arg0: i32) -> (i32, i32) {
    %c0_i32 = arith.constant 0 : i32
    %c0_i32_0 = arith.constant 0 : i32
    %c0_i32_1 = arith.constant 0 : i32
    return %c0_i32, %c0_i32_0 : i32, i32
  }
  func.func @transform_3(%arg0: i32) -> (i32, i32) {
    %c0_i32 = arith.constant 0 : i32
    %c0_i32_0 = arith.constant 0 : i32
    %c0_i32_1 = arith.constant 0 : i32
    return %c0_i32, %c0_i32_0 : i32, i32
  }
  func.func @transform_4(%arg0: i32) -> (i32, i32) {
    %c0_i32 = arith.constant 0 : i32
    %c0_i32_0 = arith.constant 0 : i32
    return %arg0, %c0_i32 : i32, i32
  }
}

</mosaic_0001>

<bundles_post_ra>
// kernel: kaln_layer.1
= control target key start
LH: loop header
LB: loop body
LE: loop exit
PB: predicated region body
PF: predicated region fallthrough
CT: control target
= control target key end

     0   :  { %9 = vsyncpa [#allocation4], 0  ;;  %s1204_s15 = smov 0   ;;  %s1206_s16 = smov 0   ;;  %s1456_s0 = inlined_call_operand.vmem [shape: f32[1,2], index: 0, kind: input, shape index: {}]   ;;  %s1457_s1 = inlined_call_operand.vmem [shape: f32[100,32], index: 1, kind: input, shape index: {}]   ;;  %s1458_s2 = inlined_call_operand.vmem [shape: f32[160,128], index: 2, kind: input, shape index: {}]   ;;  %s1459_s3 = inlined_call_operand.vmem [shape: f32[2,128], index: 3, kind: input, shape index: {}]   ;;  %s1460_s4 = inlined_call_operand.vmem [shape: f32[100,128], index: 4, kind: output, shape index: {}]  }
   0x1   :  { %s1208_s17 = smov 0  }
   0x2 LB: > { %s1217_s18 = sadd.s32 4294967295, %s1140_s17   ;;  %s1219_s19 = sadd.s32 1, %s1140_s17   ;;  %s1140_s17 = sphi %s1208_s17, %s1468_s17   ;;  %s1136_s16 = sphi %s1206_s16, %s1467_s16   ;;  %s1132_s15 = sphi %s1204_s15, %s1466_s15  }
   0x3   : > { %s108_s20 = ssub.s32 %s1140_s17, %s1219_s19  ;;  %s111_s21 = sadd.s32 1, %s1136_s16 }
   0x4   : > { %p109_p0 = scmp.eq.s32.totalorder %s108_s20, 0  ;;  %p121_p1 = scmp.ne.s32.totalorder %s1136_s16, %s1132_s15 }
   0x5   : > { %p122_p2 = scmp.eq.s32.totalorder %s1217_s18, 3  ;;  %p831_p3 = scmp.ge.s32.totalorder %s1140_s17, 1 }
   0x6   : > { %s1227_s22 = scalar_select %p109_p0, %s1136_s16, %s111_s21  }
   0x7   : > { %p1229_p4 = por %p122_p2, %p121_p1  ;;  %p135_p5 = scmp.lt.s32.totalorder %s1140_s17, 5 }
   0x8   : > { %p932_p6 = scmp.eq.s32.totalorder %s1217_s18, 0  ;;  %s148_s27 = sshll.u32 %s1456_s0, 4  ;;  %s149_s27 = int_to_ptr.vmem [resolvable:$true] %s148_s27 }
   0x9   : > { %p1234_p7 = pnand %p831_p3, %p135_p5  ;;  %s1067_s28 = scalar_lea.vmem %s149_s27, 16 }
   0xa   : > { %p1068_p10 = scmp.ne.s32.totalorder %s149_s27, %s1067_s28  ;;  %p1075_p0 = scmp.lt.s32.totalorder %s149_s27, %s149_s27 }
   0xb   : > { %p928_p8 = pneg %p1234_p7  ;;  %p1076_p1 = scmp.lt.s32.totalorder %s1067_s28, %s1067_s28 }
   0xd   : > { %p929_p9 = pnand %p932_p6, %p928_p8  ;;  %p1077_p2 = por %p1076_p1, %p1075_p0 }
   0xf   : > { %p1069_p11 = pneg %p929_p9 }
  0x11   : > { %p1070_p12 = pnand %p1069_p11, %p1068_p10 }
  0x13   : > { %p1071_p13 = pneg %p1070_p12 }
  0x15   : > { %p1078_p3 = pnand %p1077_p2, %p1071_p13 }
  0x17   : > { %1081 = shalt.err (!%p1078_p3)
}
  0x18   : > { %s1174_s29 = smov [#allocation3]   ;;  %184 = sbr.rel (%p1234_p7) target bundleno = 791 (0x317), region = 36 }
  0x19   : > { %931 = dma.vmem_to_smem (!%p929_p9), %s149_s27, 16, %s1174_s29, [#allocation4]  }
  0x1f   : > { %1127 = dma.done.wait (%p932_p6), [#allocation4], 16  }
  0x20   : > { %1129 = vsyncadd (%p932_p6), [#allocation4], 4294967280 }
  0x21   : > { %190 = sfence }
  0x22   : > { %s1252_s30 = sshll.u32 %s1217_s18, 2  ;;  %s270_s5 = sld [smem:[#allocation3]]  ;;  %v373_v0 = vld [vmem:[%s1458_s2] sm:$0xff]  ;;  %v1175_v1 = vmov 0.0|0.0   ;;  %v374_v2 = vld [vmem:[%s1458_s2 + $0x8] sm:$0xff]  ;;  %v375_v3 = vld [vmem:[%s1458_s2 + $0x10] sm:$0xff] }
  0x23   : > { %p219_p5 = scmp.lt.s32.totalorder %s1252_s30, 12  ;;  %s839_s8 = sld [smem:[#allocation3 + $0x1]]  ;;  %874 = vmatprep.subr.bf16.mxu0 %v1175_v1  ;;  %904 = vmatprep.subr.bf16.mxu1 %v1175_v1  ;;  %v376_v4 = vld [vmem:[%s1458_s2 + $0x18] sm:$0xff]  ;;  %v875_v5 = vpack.c.bf16 %v374_v2, %v373_v0  ;;  %v377_v7 = vld [vmem:[%s1458_s2 + $0x20] sm:$0xff]  ;;  %v378_v8 = vld [vmem:[%s1458_s2 + $0x28] sm:$0xff]  ;;  %vm265_vm0 = vcmask 261120  }
  0x24   : > { %v878_v6 = vpack.c.bf16 %v376_v4, %v375_v3  ;;  %v881_v14 = vpack.c.bf16 %v378_v8, %v377_v7  ;;  %v379_v24 = vld [vmem:[%s1458_s2 + $0x30] sm:$0xff]  ;;  %v380_v25 = vld [vmem:[%s1458_s2 + $0x38] sm:$0xff]  ;;  %v381_v39 = vld [vmem:[%s1458_s2 + $0x40] sm:$0xff]  ;;  %s1176_s13 = smov 64   ;;  %s1177_s24 = smov 96   ;;  %vm286_vm1 = vcmask 523520  }
  0x25   : > { %s220_s17 = scalar_select %p219_p5, %s1252_s30, 12  ;;  %876 = vmatpush1.bf16.msra.mxu0 %v875_v5  ;;  %914 = vmatpush1.bf16.msra.mxu1 %v875_v5  ;;  %v884_v36 = vpack.c.bf16 %v380_v25, %v379_v24  ;;  %v382_v40 = vld [vmem:[%s1458_s2 + $0x48] sm:$0xff]  ;;  %v383_v50 = vld [vmem:[%s1458_s2 + $0x50] sm:$0xff]  ;;  %v384_v51 = vld [vmem:[%s1458_s2 + $0x58] sm:$0xff]  ;;  %vm307_vm2 = vcmask 785920   ;;  %vm340_vm3 = vcmask 1048320  }
  0x26   : > { %877 = vmatprep.subr.bf16.mxu0 %v1175_v1  ;;  %905 = vmatprep.subr.bf16.mxu1 %v1175_v1  ;;  %v887_v46 = vpack.c.bf16 %v382_v40, %v381_v39  ;;  %v890_v63 = vpack.c.bf16 %v384_v51, %v383_v50  ;;  %v385_v4 = vld [vmem:[%s1458_s2 + $0x60] sm:$0xff]  ;;  %v386_v5 = vld [vmem:[%s1458_s2 + $0x68] sm:$0xff]  ;;  %v388_v24 = vld [vmem:[%s1458_s2 + $0x78] sm:$0xff] }
  0x27   : > { %s838_s26 = sshll.u32 %s220_s17, 3 }
  0x28   : > { %s222_s29 = scalar_lea.vmem %s1457_s1, %s838_s26  ;;  %v272_v9 = vstv %s270_s5  ;;  %s211_s26 = sand.u32 1, %s1132_s15  }
  0x29   : > { %v1281_v10 = vld [vmem:[%s222_s29] sm:$0xff]  ;;  %v277_v11 = vstv %s839_s8  ;;  %v1283_v12 = vld [vmem:[%s222_s29 + $0x18] sm:$0xff]  ;;  %v1285_v13 = vld [vmem:[%s222_s29 + $0x10] sm:$0xff]  ;;  %879 = vmatpush1.bf16.msra.mxu0 %v878_v6  ;;  %915 = vmatpush1.bf16.msra.mxu1 %v878_v6  ;;  %s836_s27 = sshll.u32 %s211_s26, 5  ;;  %s599_s15 = ssub.s32 (%p1229_p4), 13, %s1252_s30 }
  0x2a   : > { %v273_v15 = vsub.f32 %v1281_v10, %v272_v9  ;;  %v237_v16 = vsub.f32 0.0, %v1281_v10  ;;  %v276_v17 = vsub.f32 %v1283_v12, %v272_v9  ;;  %v240_v18 = vsub.f32 0.0, %v1283_v12  ;;  %v1291_v19 = vld [vmem:[%s222_s29 + $0x8] sm:$0xff]  ;;  %880 = vmatprep.subr.bf16.mxu0 %v1175_v1  ;;  %906 = vmatprep.subr.bf16.mxu1 %v1175_v1  ;;  %s1394_s28 = scalar_lea.vmem [#allocation5], %s836_s27   ;;  %s871_s29 = sshll.u32 (%p1229_p4), %s1217_s18, 5 }
  0x2b   : > { %v239_v20 = vsub.f32 0.0, %v1285_v13  ;;  %v275_v21 = vsub.f32 %v1285_v13, %v272_v9  ;;  %v238_v22 = vsub.f32 0.0, %v1291_v19  ;;  %v274_v23 = vsub.f32 %v1291_v19, %v272_v9  ;;  %p600_p6 = scmp.lt.s32.totalorder (%p1229_p4), %s599_s15, 4  ;;  %s1407_s7 = scalar_lea.vmem (%p1229_p4), %s1460_s4, %s871_s29  }
  0x2c   : > { %v278_v26 = vmul.f32 %v277_v11, %v273_v15  ;;  %v241_v27 = vmul.f32 1.442695, %v237_v16  ;;  %v281_v28 = vmul.f32 %v277_v11, %v276_v17  ;;  %v247_v29 = vmul.f32 1.442695, %v240_v18 }
  0x2d   : > { %v245_v30 = vmul.f32 1.442695, %v239_v20  ;;  %v280_v31 = vmul.f32 %v277_v11, %v275_v21  ;;  %v243_v32 = vmul.f32 1.442695, %v238_v22  ;;  %v279_v33 = vmul.f32 %v277_v11, %v274_v23  ;;  %882 = vmatpush1.bf16.msra.mxu0 %v881_v14  ;;  %916 = vmatpush1.bf16.msra.mxu1 %v881_v14  ;;  %v387_v23 = vld [vmem:[%s1458_s2 + $0x70] sm:$0xff] }
  0x2e   : > { %v840_v34 = vadd.f32 -1.0, %v278_v26  ;;  %1027 = vpow2.f32 %v241_v27  ;;  %v843_v35 = vadd.f32 -1.0, %v281_v28  ;;  %883 = vmatprep.subr.bf16.mxu0 %v1175_v1  ;;  %907 = vmatprep.subr.bf16.mxu1 %v1175_v1  ;;  %v893_v18 = vpack.c.bf16 %v386_v5, %v385_v4  ;;  %v389_v28 = vld [vmem:[%s1458_s2 + $0x80] sm:$0xff] }
  0x2f   : > { %1029 = vpow2.f32 %v247_v29  ;;  %v842_v37 = vadd.f32 -1.0, %v280_v31  ;;  %v841_v38 = vadd.f32 -1.0, %v279_v33  ;;  %v896_v27 = vpack.c.bf16 %v388_v24, %v387_v23  ;;  %v390_v29 = vld [vmem:[%s1458_s2 + $0x88] sm:$0xff]  ;;  %v391_v33 = vld [vmem:[%s1458_s2 + $0x90] sm:$0xff] }
  0x30   : > { %295 = vrot.lane.b32.xlu0 %v840_v34, %s1176_s13  ;;  %301 = vrot.lane.b32.xlu1 %v843_v35, %s1176_s13  ;;  %1031 = vpow2.f32 %v245_v30  ;;  %v312_v41 = vmul.f32 1.5, %v840_v34  ;;  %v345_v44 = vmul.f32 1.6666666, %v840_v34  ;;  %v315_v49 = vmul.f32 1.5, %v843_v35 }
  0x31   : > { %1033 = vpow2.f32 %v243_v32  ;;  %v314_v42 = vmul.f32 1.5, %v842_v37  ;;  %v313_v45 = vmul.f32 1.5, %v841_v38  ;;  %885 = vmatpush1.bf16.msra.mxu0 %v884_v36  ;;  %917 = vmatpush1.bf16.msra.mxu1 %v884_v36  ;;  %v347_v48 = vmul.f32 1.6666666, %v842_v37 }
  0x32   : > { %v316_v43 = vmul.f32 %v840_v34, %v312_v41  ;;  %886 = vmatprep.subr.bf16.mxu0 %v1175_v1  ;;  %908 = vmatprep.subr.bf16.mxu1 %v1175_v1  ;;  %v353_v53 = vmul.f32 0.6666667, %v840_v34  ;;  %v346_v55 = vmul.f32 1.6666666, %v841_v38  ;;  %v355_v57 = vmul.f32 0.6666667, %v842_v37 }
  0x33   : > { %v318_v47 = vmul.f32 %v842_v37, %v314_v42  ;;  %v317_v54 = vmul.f32 %v841_v38, %v313_v45  ;;  %v319_v58 = vmul.f32 %v843_v35, %v315_v49  ;;  %v348_v59 = vmul.f32 1.6666666, %v843_v35  ;;  %v392_v34 = vld [vmem:[%s1458_s2 + $0x98] sm:$0xff] }
  0x34   : > { %299 = vrot.lane.b32.xlu0 %v842_v37, %s1176_s13  ;;  %v844_v52 = vadd.f32 -0.5, %v316_v43  ;;  %v354_v62 = vmul.f32 0.6666667, %v841_v38  ;;  %v356_v3 = vmul.f32 0.6666667, %v843_v35  ;;  %v899_v31 = vpack.c.bf16 %v390_v29, %v389_v28 }
  0x35   : > { %v846_v56 = vadd.f32 -0.5, %v318_v47  ;;  %v845_v61 = vadd.f32 -0.5, %v317_v54  ;;  %888 = vmatpush1.bf16.msra.mxu0 %v887_v46  ;;  %v847_v2 = vadd.f32 -0.5, %v319_v58  ;;  %918 = vmatpush1.bf16.msra.mxu1 %v887_v46  ;;  %v1178_v43 = vmov 1.0  }
  0x36   : > { %328 = vrot.lane.b32.xlu1 %v844_v52, %s1177_s24  ;;  %v349_v60 = vmul.f32 %v844_v52, %v345_v44  ;;  %889 = vmatprep.subr.bf16.mxu0 %v1175_v1 }
  0x37   : > { %v351_v0 = vmul.f32 %v846_v56, %v347_v48  ;;  %v350_v8 = vmul.f32 %v845_v61, %v346_v55  ;;  %909 = vmatprep.subr.bf16.mxu1 %v1175_v1  ;;  %v352_v14 = vmul.f32 %v847_v2, %v348_v59 }
  0x38   : > { %v1028_v6 = vpop.eup %1027  ;;  %v357_v7 = vsub.f32 %v349_v60, %v353_v53  ;;  %297 = vrot.lane.b32.xlu0 %v841_v38, %s1176_s13  ;;  %v902_v38 = vpack.c.bf16 %v392_v34, %v391_v33 }
  0x39   : > { %v1030_v9 = vpop.eup %1029  ;;  %v359_v11 = vsub.f32 %v351_v0, %v355_v57  ;;  %v249_v15 = vadd.f32 1.0, %v1028_v6  ;;  %v358_v17 = vsub.f32 %v350_v8, %v354_v62  ;;  %891 = vmatpush1.bf16.msra.mxu0 %v890_v63  ;;  %v360_v22 = vsub.f32 %v352_v14, %v356_v3  ;;  %919 = vmatpush1.bf16.msra.mxu1 %v890_v63 }
  0x3a   : > { %v1032_v16 = vpop.eup %1031  ;;  %361 = vst.msk [vmem:[#allocation2 + $0x8] sm:$0xff] %vm265_vm0, %v357_v7  ;;  %332 = vrot.lane.b32.xlu1 %v846_v56, %s1177_s24  ;;  %v252_v20 = vadd.f32 1.0, %v1030_v9  ;;  %892 = vmatprep.subr.bf16.mxu0 %v1175_v1  ;;  %v506_v62 = vlaneseq }
  0x3b   : > { %v1034_v21 = vpop.eup %1033  ;;  %363 = vst.msk [vmem:[#allocation2 + $0x28] sm:$0xff] %vm265_vm0, %v359_v11  ;;  %1035 = vrcp.f32 %v249_v15  ;;  %v251_v25 = vadd.f32 1.0, %v1032_v16  ;;  %362 = vst.msk [vmem:[#allocation2 + $0x18] sm:$0xff] %vm265_vm0, %v358_v17  ;;  %910 = vmatprep.subr.bf16.mxu1 %v1175_v1 }
  0x3c   : > { %330 = vrot.lane.b32.xlu0 %v845_v61, %s1177_s24  ;;  %1037 = vrcp.f32 %v252_v20  ;;  %v250_v26 = vadd.f32 1.0, %v1034_v21  ;;  %364 = vst.msk [vmem:[#allocation2 + $0x38] sm:$0xff] %vm265_vm0, %v360_v22  ;;  %v507_v63 = vand.u32 127, %v506_v62 }
  0x3d   : > { %1039 = vrcp.f32 %v251_v25  ;;  %894 = vmatpush1.bf16.msra.mxu0 %v893_v18  ;;  %920 = vmatpush1.bf16.msra.mxu1 %v893_v18 }
  0x3e   : > { %334 = vrot.lane.b32.xlu1 %v847_v2, %s1177_s24  ;;  %1041 = vrcp.f32 %v250_v26  ;;  %895 = vmatprep.subr.bf16.mxu0 %v1175_v1  ;;  %vm508_vm4 = vcmp.lt.s32.totalorder %v507_v63, 64 }
  0x3f   : > { %911 = vmatprep.subr.bf16.mxu1 %v1175_v1 }
  0x41   : > { %v366_v30 = vld [vmem:[#allocation2 + $0x8] sm:$0xff]  ;;  %897 = vmatpush1.bf16.msra.mxu0 %v896_v27  ;;  %921 = vmatpush1.bf16.msra.mxu1 %v896_v27 }
  0x42   : > { %848 = vmatprep.mubr.msk.f32.mxu0 %vm265_vm0, %v366_v30  ;;  %v370_v32 = vld [vmem:[#allocation2 + $0x28] sm:$0xff]  ;;  %898 = vmatprep.subr.bf16.mxu0 %v1175_v1  ;;  %v368_v47 = vld [vmem:[#allocation2 + $0x18] sm:$0xff] }
  0x43   : > { %912 = vmatprep.subr.bf16.mxu1 %v1175_v1  ;;  %850 = vmatprep.mubr.msk.f32.mxu1 %vm265_vm0, %v370_v32  ;;  %v372_v50 = vld [vmem:[#allocation2 + $0x38] sm:$0xff] }
  0x45   : > { %v1036_v35 = vpop.eup %1035  ;;  %900 = vmatpush1.bf16.msra.mxu0 %v899_v31  ;;  %922 = vmatpush1.bf16.msra.mxu1 %v899_v31 }
  0x46   : > { %v1038_v36 = vpop.eup %1037  ;;  %v261_v37 = vmul.f32 %v1036_v35, %v1281_v10  ;;  %901 = vmatprep.subr.bf16.mxu0 %v1175_v1  ;;  %913 = vmatprep.subr.bf16.mxu1 %v1175_v1 }
  0x47   : > { %v1040_v39 = vpop.eup %1039  ;;  %v264_v40 = vmul.f32 %v1038_v36, %v1283_v12 }
  0x48   : > { %v1042_v41 = vpop.eup %1041  ;;  %266 = vst.msk [vmem:[#allocation2] sm:$0xff] %vm265_vm0, %v261_v37  ;;  %v263_v42 = vmul.f32 %v1040_v39, %v1285_v13 }
  0x49   : > { %287 = vst.msk [vmem:[#allocation2] sm:$0xff] %vm286_vm1, %v1178_v43  ;;  %v262_v10 = vmul.f32 %v1042_v41, %v1291_v19  ;;  %903 = vmatpush1.bf16.msra.mxu0 %v902_v38  ;;  %923 = vmatpush1.bf16.msra.mxu1 %v902_v38  ;;  %v852_v38 = vld [vmem:[%s1459_s3] ss:$0 sm:$0xff] }
  0x4a   : > { %269 = vst.msk [vmem:[#allocation2 + $0x30] sm:$0xff] %vm265_vm0, %v264_v40  ;;  %268 = vst.msk [vmem:[#allocation2 + $0x20] sm:$0xff] %vm265_vm0, %v263_v42  ;;  %v853_v40 = vld [vmem:[%s1459_s3 + $0x1] ss:$0 sm:$0xff] }
  0x4b   : > { %290 = vst.msk [vmem:[#allocation2 + $0x30] sm:$0xff] %vm286_vm1, %v1178_v43  ;;  %289 = vst.msk [vmem:[#allocation2 + $0x20] sm:$0xff] %vm286_vm1, %v1178_v43 }
  0x4c   : > { %267 = vst.msk [vmem:[#allocation2 + $0x10] sm:$0xff] %vm265_vm0, %v262_v10 }
  0x4d   : > { %288 = vst.msk [vmem:[#allocation2 + $0x10] sm:$0xff] %vm286_vm1, %v1178_v43 }
  0xa2   : > { %v296_v1 = vpop.permute.xlu0 %295  ;;  %v302_v12 = vpop.permute.xlu1 %301 }
  0xa3   : > { %308 = vst.msk [vmem:[#allocation2] sm:$0xff] %vm307_vm2, %v296_v1  ;;  %311 = vst.msk [vmem:[#allocation2 + $0x30] sm:$0xff] %vm307_vm2, %v302_v12 }
  0xa6   : > { %v300_v13 = vpop.permute.xlu0 %299 }
  0xa7   : > { %310 = vst.msk [vmem:[#allocation2 + $0x20] sm:$0xff] %vm307_vm2, %v300_v13 }
  0xa8   : > { %v329_v19 = vpop.permute.xlu1 %328 }
  0xa9   : > { %341 = vst.msk [vmem:[#allocation2] sm:$0xff] %vm340_vm3, %v329_v19 }
  0xaa   : > { %v298_v44 = vpop.permute.xlu0 %297 }
  0xab   : > { %309 = vst.msk [vmem:[#allocation2 + $0x10] sm:$0xff] %vm307_vm2, %v298_v44 }
  0xac   : > { %v333_v45 = vpop.permute.xlu1 %332 }
  0xad   : > { %343 = vst.msk [vmem:[#allocation2 + $0x20] sm:$0xff] %vm340_vm3, %v333_v45 }
  0xae   : > { %v331_v46 = vpop.permute.xlu0 %330 }
  0xaf   : > { %342 = vst.msk [vmem:[#allocation2 + $0x10] sm:$0xff] %vm340_vm3, %v331_v46 }
  0xb0   : > { %v335_v48 = vpop.permute.xlu1 %334  ;;  %v365_v49 = vld [vmem:[#allocation2] sm:$0xff] }
  0xb1   : > { %344 = vst.msk [vmem:[#allocation2 + $0x30] sm:$0xff] %vm340_vm3, %v335_v48  ;;  %470 = vmatmul.mubr.f32.vlgmr.msra.gmra.mrb[0].mxu0 %v365_v49 }
  0xb2   : > { %849 = vmatprep.mubr.msk.f32.mxu0 %vm265_vm0, %v368_v47 }
  0xb4   : > { %v369_v51 = vld [vmem:[#allocation2 + $0x20] sm:$0xff] }
  0xb5   : > { %480 = vmatmul.mubr.f32.vlgmr.msra.gmra.mrb[0].mxu1 %v369_v51 }
  0xb6   : > { %v367_v52 = vld [vmem:[#allocation2 + $0x10] sm:$0xff]  ;;  %851 = vmatprep.mubr.msk.f32.mxu1 %vm265_vm0, %v372_v50 }
  0xb7   : > { %475 = vmatmul.mubr.f32.gmra.mrb[2].mxu0 %v367_v52 }
  0xb8   : > { %v371_v53 = vld [vmem:[#allocation2 + $0x30] sm:$0xff] }
  0xb9   : > { %485 = vmatmul.mubr.f32.gmra.mrb[2].mxu1 %v371_v53 }
 0x184   : > { %v471_v54 = vpop.f32.mrb[0].mxu0 }
 0x185   : > { %490 = vadd.xlane.f32.xlu0 %v471_v54  ;;  %v473_v55 = vpop.f32.mrb[1].mxu0 }
 0x188   : > { %v481_v56 = vpop.f32.mrb[0].mxu1 }
 0x189   : > { %494 = vadd.xlane.f32.xlu0 %v481_v56  ;;  %v483_v57 = vpop.f32.mrb[1].mxu1 }
 0x18a   : > { %v476_v58 = vpop.f32.mrb[2].mxu0 }
 0x18b   : > { %492 = vadd.xlane.f32.xlu1 %v476_v58  ;;  %v478_v59 = vpop.f32.mrb[3].mxu0 }
 0x18c   : > { %v486_v60 = vpop.f32.mrb[2].mxu1 }
 0x18d   : > { %496 = vadd.xlane.f32.xlu0 %v486_v60  ;;  %v488_v61 = vpop.f32.mrb[3].mxu1 }
 0x212   : > { %v491_v0 = vpop.xlane.xlu0 %490 }
 0x213   : > { %v498_v2 = vmul.f32 0.015625, %v491_v0 }
 0x215   : > { %v502_v3 = vsub.f32 %v471_v54, %v498_v2 }
 0x216   : > { %v495_v4 = vpop.xlane.xlu0 %494 }
 0x217   : > { %v500_v5 = vmul.f32 0.015625, %v495_v4  ;;  %v509_v6 = vsel %vm508_vm4, %v502_v3, 0.0 }
 0x218   : > { %v493_v7 = vpop.xlane.xlu1 %492  ;;  %v513_v8 = vmul.f32 %v509_v6, %v509_v6 }
 0x219   : > { %v504_v9 = vsub.f32 %v481_v56, %v500_v5  ;;  %v499_v11 = vmul.f32 0.015625, %v493_v7 }
 0x21a   : > { %v497_v14 = vpop.xlane.xlu0 %496  ;;  %517 = vadd.xlane.f32.xlu1 %v513_v8 }
 0x21b   : > { %v503_v15 = vsub.f32 %v476_v58, %v499_v11  ;;  %v501_v16 = vmul.f32 0.015625, %v497_v14  ;;  %v511_v17 = vsel %vm508_vm4, %v504_v9, 0.0 }
 0x21c   : > { %v515_v18 = vmul.f32 %v511_v17, %v511_v17 }
 0x21d   : > { %v505_v20 = vsub.f32 %v486_v60, %v501_v16  ;;  %v510_v21 = vsel %vm508_vm4, %v503_v15, 0.0 }
 0x21e   : > { %521 = vadd.xlane.f32.xlu1 %v515_v18  ;;  %v514_v22 = vmul.f32 %v510_v21, %v510_v21 }
 0x21f   : > { %v512_v23 = vsel %vm508_vm4, %v505_v20, 0.0 }
 0x220   : > { %519 = vadd.xlane.f32.xlu0 %v514_v22  ;;  %v516_v24 = vmul.f32 %v512_v23, %v512_v23 }
 0x224   : > { %523 = vadd.xlane.f32.xlu0 %v516_v24 }
 0x2a7   : > { %v518_v25 = vpop.xlane.xlu1 %517 }
 0x2a8   : > { %v525_v26 = vmul.f32 0.015625, %v518_v25 }
 0x2aa   : > { %v529_v27 = vadd.f32 1e-05, %v525_v26 }
 0x2ab   : > { %v522_v28 = vpop.xlane.xlu1 %521 }
 0x2ac   : > { %1043 = vrsqrt.f32 %v529_v27  ;;  %v527_v29 = vmul.f32 0.015625, %v522_v28 }
 0x2ad   : > { %v520_v30 = vpop.xlane.xlu0 %519 }
 0x2ae   : > { %v531_v31 = vadd.f32 1e-05, %v527_v29  ;;  %v526_v32 = vmul.f32 0.015625, %v520_v30 }
 0x2b0   : > { %1045 = vrsqrt.f32 %v531_v31  ;;  %v530_v33 = vadd.f32 1e-05, %v526_v32 }
 0x2b1   : > { %v524_v34 = vpop.xlane.xlu0 %523 }
 0x2b2   : > { %1047 = vrsqrt.f32 %v530_v33  ;;  %v528_v35 = vmul.f32 0.015625, %v524_v34 }
 0x2b4   : > { %v532_v36 = vadd.f32 1e-05, %v528_v35 }
 0x2b6   : > { %v1044_v37 = vpop.eup %1043  ;;  %1049 = vrsqrt.f32 %v532_v36 }
 0x2b7   : > { %v537_v39 = vmul.f32 %v1044_v37, %v509_v6 }
 0x2b9   : > { %v546_v41 = vmul.f32 %v852_v38, %v537_v39 }
 0x2ba   : > { %v1046_v42 = vpop.eup %1045 }
 0x2bb   : > { %v555_v43 = vadd.f32 %v853_v40, %v546_v41  ;;  %v539_v10 = vmul.f32 %v1046_v42, %v511_v17 }
 0x2bc   : > { %v1048_v1 = vpop.eup %1047 }
 0x2bd   : > { %v559_v12 = vsub.f32 0.0, %v555_v43  ;;  %v548_v13 = vmul.f32 %v852_v38, %v539_v10  ;;  %v538_v19 = vmul.f32 %v1048_v1, %v510_v21 }
 0x2bf   : > { %v563_v44 = vmul.f32 1.442695, %v559_v12  ;;  %v557_v45 = vadd.f32 %v853_v40, %v548_v13  ;;  %v547_v46 = vmul.f32 %v852_v38, %v538_v19 }
 0x2c0   : > { %v1050_v47 = vpop.eup %1049 }
 0x2c1   : > { %1051 = vpow2.f32 %v563_v44  ;;  %v561_v48 = vsub.f32 0.0, %v557_v45  ;;  %v556_v49 = vadd.f32 %v853_v40, %v547_v46  ;;  %v540_v50 = vmul.f32 %v1050_v47, %v512_v23 }
 0x2c3   : > { %v567_v51 = vmul.f32 1.442695, %v561_v48  ;;  %v560_v52 = vsub.f32 0.0, %v556_v49  ;;  %v549_v53 = vmul.f32 %v852_v38, %v540_v50 }
 0x2c5   : > { %1053 = vpow2.f32 %v567_v51  ;;  %v565_v54 = vmul.f32 1.442695, %v560_v52  ;;  %v558_v55 = vadd.f32 %v853_v40, %v549_v53 }
 0x2c7   : > { %1055 = vpow2.f32 %v565_v54  ;;  %v562_v56 = vsub.f32 0.0, %v558_v55 }
 0x2c9   : > { %v569_v57 = vmul.f32 1.442695, %v562_v56 }
 0x2cb   : > { %v1052_v58 = vpop.eup %1051  ;;  %1057 = vpow2.f32 %v569_v57 }
 0x2cc   : > { %v571_v59 = vadd.f32 1.0, %v1052_v58 }
 0x2ce   : > { %1059 = vrcp.f32 %v571_v59 }
 0x2cf   : > { %v1054_v60 = vpop.eup %1053 }
 0x2d0   : > { %v573_v61 = vadd.f32 1.0, %v1054_v60 }
 0x2d1   : > { %v1056_v62 = vpop.eup %1055 }
 0x2d2   : > { %1061 = vrcp.f32 %v573_v61  ;;  %v572_v63 = vadd.f32 1.0, %v1056_v62 }
 0x2d4   : > { %1063 = vrcp.f32 %v572_v63 }
 0x2d5   : > { %v1058_v0 = vpop.eup %1057 }
 0x2d6   : > { %v574_v2 = vadd.f32 1.0, %v1058_v0 }
 0x2d8   : > { %v1060_v3 = vpop.eup %1059  ;;  %1065 = vrcp.f32 %v574_v2 }
 0x2d9   : > { %v583_v4 = vmul.f32 %v1060_v3, %v555_v43 }
 0x2db   : > { %587 = vst [vmem:[%s1394_s28] sm:$0xff] %v583_v4 }
 0x2dc   : > { %v1062_v5 = vpop.eup %1061 }
 0x2dd   : > { %v585_v6 = vmul.f32 %v1062_v5, %v557_v45 }
 0x2de   : > { %v1064_v7 = vpop.eup %1063 }
 0x2df   : > { %589 = vst [vmem:[%s1394_s28 + $0x10] sm:$0xff] %v585_v6  ;;  %v584_v8 = vmul.f32 %v1064_v7, %v556_v49  ;;  %597 = sbr.rel (!%p1229_p4) target bundleno = 791 (0x317), region = 44 }
 0x2e1   : > { %588 = vst [vmem:[%s1394_s28 + $0x8] sm:$0xff] %v584_v8 }
 0x2e2   : > { %v1066_v9 = vpop.eup %1065 }
 0x2e3   : > { %v586_v11 = vmul.f32 %v1066_v9, %v558_v55 }
 0x2e5   : > { %590 = vst [vmem:[%s1394_s28 + $0x18] sm:$0xff] %v586_v11 }
 0x2e6   : > { %s1470_s15 = smov (!%p600_p6, %s599_s15), 4 }
 0x2e7   : > { %s856_s8 = sshll.u32 %s1470_s15, 7 }
 0x2e8   : > { %p859_p7 = scmp.eq.s32.totalorder %s856_s8, 0 }
 0x2e9   : > { %s1413_s9 = sshrl.u32 (!%p859_p7), %s1470_s15, 2 }
 0x2ea   : > { %608 = sbr.rel (%p859_p7) target bundleno = 791 (0x317), region = 48  ;;  %p860_p4 = scmp.le.s32.totalorder (!%p859_p7), %s1413_s9, 0 }
 0x2f1   : > { %777 = sbr.rel (%p860_p4) target bundleno = 770 (0x302), region = 125  ;;  %s1463_s18 = smov (!%p860_p4), %s1407_s7 }
 0x2f2   : > { %s1464_s23 = smov (!%p860_p4), %s1394_s28  ;;  %s1422_s30 = smov (!%p860_p4), 0  }
 0x2f3   : > { %s1154_s10 = smov (!%p860_p4), 0  }
 0x2f8 LB: >> { %v676_v14 = vld [vmem:[%s1148_s23] sm:$0xff]  ;;  %v678_v15 = vld [vmem:[%s1148_s23 + $0x8] sm:$0xff]  ;;  %v680_v16 = vld [vmem:[%s1148_s23 + $0x10] sm:$0xff]  ;;  %s684_s11 = sadd.s32 1, %s1152_s30  ;;  %s670_s10 = sadd.s32 1, %s1156_s10   ;;  %s1156_s10 = sphi %s1154_s10, %s670_s10   ;;  %s1152_s30 = sphi %s1422_s30, %s1465_s30   ;;  %s1148_s23 = sphi %s1464_s23, %s689_s23   ;;  %s1144_s18 = sphi %s1463_s18, %s690_s18  }
 0x2f9   : >> { %677 = vst [vmem:[%s1144_s18] sm:$0xff] %v676_v14  ;;  %679 = vst [vmem:[%s1144_s18 + $0x8] sm:$0xff] %v678_v15  ;;  %v682_v17 = vld [vmem:[%s1148_s23 + $0x18] sm:$0xff]  ;;  %p685_p8 = scmp.ge.s32.totalorder %s684_s11, %s1413_s9  ;;  %p669_p9 = scmp.ge.s32.totalorder %s670_s10, %s1413_s9 }
 0x2fa   : >> { %681 = vst [vmem:[%s1144_s18 + $0x10] sm:$0xff] %v680_v16  ;;  %683 = vst [vmem:[%s1144_s18 + $0x18] sm:$0xff] %v682_v17 }
 0x2fb   : >> { %s1472_s11 = smov (%p685_p8, %s684_s11), 0  ;;  %672 = sbr.rel (!%p669_p9) target bundleno = 760 (0x2f8), region = 131 }
 0x2fc   : >> { %s861_s12 = sshll.u32 %s1472_s11, 5  ;;  %s1465_s30 = smov %s1472_s11 }
 0x2fd   : >> { %s689_s23 = scalar_lea.vmem %s1394_s28, %s861_s12 [#allocation5]   ;;  %s690_s18 = scalar_lea.vmem %s1407_s7, %s861_s12  }
 0x302 PF: > { %s1438_s13 = sand.u32 3, %s1470_s15   ;;  %s872_s14 = sshll.u32 %s1413_s9, 5 }
 0x303   : > { %s695_s17 = scalar_lea.vmem %s1394_s28, %s872_s14 [#allocation5]   ;;  %s697_s20 = scalar_lea.vmem %s1407_s7, %s872_s14  }
 0x304   : > { %p866_p10 = scmp.le.s32.totalorder %s1438_s13, 0 }
 0x305   : > { %s1158_s21 = smov (!%p866_p10), %s697_s20   ;;  %s1162_s24 = smov (!%p866_p10), %s695_s17  }
 0x306   : > { %791 = sbr.rel (%p866_p10) target bundleno = 791 (0x317), region = 136  ;;  %s1166_s25 = smov (!%p866_p10), 0  }
 0x307   : > { %s1170_s26 = smov (!%p866_p10), 0  }
 0x30d LB: >> { %v707_v18 = vld [vmem:[%s1164_s24] sm:$0xff]  ;;  %s709_s27 = sadd.s32 1, %s1168_s25  ;;  %s701_s26 = sadd.s32 1, %s1172_s26   ;;  %s1172_s26 = sphi %s1170_s26, %s701_s26   ;;  %s1168_s25 = sphi %s1166_s25, %s1167_s25   ;;  %s1164_s24 = sphi %s1162_s24, %s714_s24   ;;  %s1160_s21 = sphi %s1158_s21, %s715_s21  }
 0x30e   : >> { %708 = vst [vmem:[%s1160_s21] sm:$0xff] %v707_v18  ;;  %p710_p11 = scmp.ge.s32.totalorder %s709_s27, %s1438_s13  ;;  %p700_p12 = scmp.ge.s32.totalorder %s701_s26, %s1438_s13 }
 0x310   : >> { %s1474_s27 = smov (%p710_p11, %s709_s27), 0  ;;  %703 = sbr.rel (!%p700_p12) target bundleno = 781 (0x30d), region = 142 }
 0x311   : >> { %s867_s28 = sshll.u32 %s1474_s27, 3  ;;  %s1167_s25 = smov %s1474_s27  }
 0x312   : >> { %s714_s24 = scalar_lea.vmem %s695_s17, %s867_s28 [#allocation5]   ;;  %s715_s21 = scalar_lea.vmem %s697_s20, %s867_s28  }
 0x317 PF: > { %p12_p13 = scmp.ge.s32.totalorder %s1219_s19, 6   ;;  %s1466_s15 = smov %s1136_s16 }
 0x318   : > { %s1467_s16 = smov %s1227_s22  ;;  %s1468_s17 = smov %s1219_s19 }
 0x319   :  { %14 = sbr.rel (!%p12_p13) target bundleno = 2 (0x2), region = 153 }
 0x320   :  { %731 = vsyncpa [#allocation4], 1 }
 0x321   :  { %733 = vsyncpa [#allocation4 + $0x1], 1 }

</bundles_post_ra>
